<compile_context>
chip_gen: v7x
topology: tpu7x:2x2x1
jax: 0.10.0
libtpu: 0.0.40
codegen_flags: <defaults>
</compile_context>

<pallas_src>
import jax
import jax.numpy as jnp
from jax.experimental import pallas as pl
from jax.experimental.pallas import tpu as pltpu

LANES = 128
SUBLANES = 8
MAX_BLOCK_ROWS = 2048          # 2048*128*4B = 1 MiB per input block


# ---------------------------- fused two-phase kernel -------------------------
def _kl_kernel(n_ref, yt_ref, yp_ref, out_ref,
               max_acc, st_acc, sp_acc, loss_acc, scal_ref):
    phase = pl.program_id(0)
    t = pl.program_id(1)
    nt = pl.num_programs(1)
    n = n_ref[0]

    block_rows = yt_ref.shape[0]
    row_id = jax.lax.broadcasted_iota(jnp.int32, (block_rows, LANES), 0)
    lane_id = jax.lax.broadcasted_iota(jnp.int32, (block_rows, LANES), 1)
    gidx = (t * block_rows + row_id) * LANES + lane_id
    valid = gidx < n

    yt = yt_ref[...]
    yp = yp_ref[...]

    neg_big = float(jnp.finfo(jnp.float32).min)

    # -------- phase 0: global max(y_pred), sum(y_true), sum(y_pred) ----------
    @pl.when(phase == 0)
    def _():
        @pl.when(t == 0)
        def _():
            max_acc[...] = jnp.full_like(max_acc, neg_big)
            st_acc[...] = jnp.zeros_like(st_acc)
            sp_acc[...] = jnp.zeros_like(sp_acc)
            out_ref[...] = jnp.zeros_like(out_ref)

        # pure elementwise (VPU) accumulation; cross-lane reduce only once
        max_acc[...] = jnp.maximum(max_acc[...], jnp.where(valid, yp, neg_big))
        st_acc[...] = st_acc[...] + jnp.where(valid, yt, 0.0)
        sp_acc[...] = sp_acc[...] + jnp.where(valid, yp, 0.0)

        @pl.when(t == nt - 1)
        def _():
            max_p = jnp.max(max_acc[...])
            sum_t = jnp.sum(st_acc[...])
            sum_p_raw = jnp.sum(sp_acc[...])
            inv_max = 1.0 / max_p
            # sum(y_pred / max) == sum(y_pred) * (1/max)  (division is linear)
            sum_p = sum_p_raw * inv_max
            scal_ref[0] = inv_max
            scal_ref[1] = 1.0 / (sum_t + 1e-10)
            scal_ref[2] = 1.0 / (sum_p + 1e-10)

    # -------- phase 1: weighted log-ratio loss --------------------------------
    @pl.when(phase == 1)
    def _():
        inv_max = scal_ref[0]
        inv_sum_t = scal_ref[1]
        inv_sum_p = scal_ref[2]

        @pl.when(t == 0)
        def _():
            loss_acc[...] = jnp.zeros_like(loss_acc)

        y_bool = (yt > 0.1).astype(jnp.float32)
        yt_n = yt * inv_sum_t                     # y_true / (sum_y_true + eps)
        yp_n = yp * (inv_max * inv_sum_p)         # (y_pred/max) / (sum + eps)
        contrib = y_bool * yt_n * jnp.log(yt_n / (yp_n + 1e-10) + 1e-10)
        loss_acc[...] = loss_acc[...] + jnp.where(valid, contrib, 0.0)

        @pl.when(t == nt - 1)
        def _():
            out_ref[...] = jnp.sum(loss_acc[...], keepdims=True)


# ---------------------------- wrapper / layout glue ---------------------------
def _to_slab(x):
    """Flatten to (rows, 128) f32 slab, rows padded to a multiple of 8."""
    flat = jnp.ravel(x).astype(jnp.float32)
    n = flat.shape[0]
    rows = -(-n // LANES)
    rows = max(SUBLANES, -(-rows // SUBLANES) * SUBLANES)
    pad = rows * LANES - n
    if pad:
        flat = jnp.pad(flat, (0, pad))
    return flat.reshape(rows, LANES), n


def kl_divergence(y_true, y_pred):
    yt, n = _to_slab(y_true)
    yp, n2 = _to_slab(y_pred)
    assert n == n2, "y_true / y_pred must have the same number of elements"
    rows = yt.shape[0]

    # Large lane-dense blocks; pad rows so the block divides them evenly.
    block_rows = min(rows, MAX_BLOCK_ROWS)
    if rows % block_rows:
        extra = block_rows - rows % block_rows
        yt = jnp.pad(yt, ((0, extra), (0, 0)))
        yp = jnp.pad(yp, ((0, extra), (0, 0)))
        rows += extra
    num_tiles = rows // block_rows

    tile_spec = pl.BlockSpec((block_rows, LANES), lambda p, t, n_ref: (t, 0))

    out = pl.pallas_call(
        _kl_kernel,
        out_shape=jax.ShapeDtypeStruct((1, 1), jnp.float32),
        grid_spec=pltpu.PrefetchScalarGridSpec(
            num_scalar_prefetch=1,
            grid=(2, num_tiles),
            in_specs=[tile_spec, tile_spec],
            out_specs=pl.BlockSpec((1, 1), lambda p, t, n_ref: (0, 0)),
            scratch_shapes=[
                pltpu.VMEM((block_rows, LANES), jnp.float32),   # max accum
                pltpu.VMEM((block_rows, LANES), jnp.float32),   # sum(y_true)
                pltpu.VMEM((block_rows, LANES), jnp.float32),   # sum(y_pred)
                pltpu.VMEM((block_rows, LANES), jnp.float32),   # loss accum
                pltpu.SMEM((3,), jnp.float32),                  # reciprocals
            ]),
        compiler_params=pltpu.CompilerParams(
            dimension_semantics=("arbitrary", "arbitrary")),
    )(jnp.array([n], jnp.int32), yt, yp)

    return out[0, 0]


# ---------------------------- pure-JAX reference ------------------------------
def _ref_kl_divergence(y_true, y_pred):
    max_y_pred = jnp.max(y_pred)
    y_pred = y_pred / max_y_pred
    y_bool = (y_true > 0.1).astype(jnp.float32)
    sum_y_true = jnp.sum(y_true)
    sum_y_pred = jnp.sum(y_pred)
    y_true = y_true / (sum_y_true + 1e-10)
    y_pred = y_pred / (sum_y_pred + 1e-10)
    return jnp.sum(y_bool * y_true * jnp.log(y_true / (y_pred + 1e-10) + 1e-10))


if __name__ == "__main__":
    key = jax.random.PRNGKey(0)
    k1, k2 = jax.random.split(key)
    # NCHW-style inputs, small shapes
    y_true = jax.random.uniform(k1, (2, 4, 16, 16), dtype=jnp.float32)
    y_pred = jax.random.uniform(k2, (2, 4, 16, 16), dtype=jnp.float32) + 0.05

    out = jax.jit(kl_divergence)(y_true, y_pred)
    out = jax.block_until_ready(out)

    ref = _ref_kl_divergence(y_true, y_pred)
    assert jnp.isfinite(out), "kernel produced non-finite loss"
    assert jnp.allclose(out, ref, rtol=1e-4, atol=1e-5), (out, ref)
    print("KERNEL_OK")
</pallas_src>

<mosaic_0001>
module attributes {stable_mosaic.version = 11 : i64} {
  func.func @_kl_kernel(%arg0: i32, %arg1: i32, %arg2: memref<1xi32, #tpu.memory_space<smem>>, %arg3: memref<16x128xf32, #tpu.memory_space<vmem>>, %arg4: memref<16x128xf32, #tpu.memory_space<vmem>>, %arg5: memref<1x1xf32, #tpu.memory_space<vmem>>, %arg6: memref<16x128xf32, #tpu.memory_space<vmem>>, %arg7: memref<16x128xf32, #tpu.memory_space<vmem>>, %arg8: memref<16x128xf32, #tpu.memory_space<vmem>>, %arg9: memref<16x128xf32, #tpu.memory_space<vmem>>, %arg10: memref<3xf32, #tpu.memory_space<smem>>) attributes {dimension_semantics = [#tpu.dimension_semantics<arbitrary>, #tpu.dimension_semantics<arbitrary>], iteration_bounds = array<i64: 2, 1>, scalar_prefetch = 1 : i64, scratch_operands = 5 : i64, tpu.core_type = #tpu.core_type<tc>, window_params = [{transform_indices = @transform_0, window_bounds = array<i64: 16, 128>}, {transform_indices = @transform_1, window_bounds = array<i64: 16, 128>}, {pipeline_mode = #tpu.pipeline_mode<synchronous>, transform_indices = @transform_2, window_bounds = array<i64: 1, 1>}]} {
    %c0 = arith.constant 0 : index
    %0 = memref.load %arg2[%c0] : memref<1xi32, #tpu.memory_space<smem>>
    %1 = tpu.iota {dimensions = array<i32: 0>} : vector<16x128xi32>
    %2 = tpu.iota {dimensions = array<i32: 1>} : vector<16x128xi32>
    %c16_i32 = arith.constant 16 : i32
    %3 = arith.muli %arg1, %c16_i32 : i32
    %4 = vector.broadcast %3 : i32 to vector<16x128xi32>
    %5 = arith.addi %4, %1 : vector<16x128xi32>
    %c128_i32 = arith.constant 128 : i32
    %6 = vector.broadcast %c128_i32 : i32 to vector<16x128xi32>
    %7 = arith.muli %5, %6 : vector<16x128xi32>
    %8 = arith.addi %7, %2 : vector<16x128xi32>
    %9 = vector.broadcast %0 : i32 to vector<16x128xi32>
    %10 = arith.cmpi slt, %8, %9 : vector<16x128xi32>
    %c0_0 = arith.constant 0 : index
    %c0_1 = arith.constant 0 : index
    %11 = vector.load %arg3[%c0_0, %c0_1] : memref<16x128xf32, #tpu.memory_space<vmem>>, vector<16x128xf32>
    %c0_2 = arith.constant 0 : index
    %c0_3 = arith.constant 0 : index
    %12 = vector.load %arg4[%c0_2, %c0_3] : memref<16x128xf32, #tpu.memory_space<vmem>>, vector<16x128xf32>
    %c0_i32 = arith.constant 0 : i32
    %13 = arith.cmpi eq, %arg0, %c0_i32 : i32
    %14 = arith.extui %13 : i1 to i32
    %c0_i32_4 = arith.constant 0 : i32
    %15 = arith.cmpi ne, %14, %c0_i32_4 : i32
    scf.if %15 {
      %c0_i32_6 = arith.constant 0 : i32
      %19 = arith.cmpi eq, %arg1, %c0_i32_6 : i32
      %20 = arith.extui %19 : i1 to i32
      %c0_i32_7 = arith.constant 0 : i32
      %21 = arith.cmpi ne, %20, %c0_i32_7 : i32
      scf.if %21 {
        %cst_24 = arith.constant -3.40282347E+38 : f32
        %40 = vector.broadcast %cst_24 : f32 to vector<16x128xf32>
        %c0_25 = arith.constant 0 : index
        %c0_26 = arith.constant 0 : index
        %41 = vector.load %arg6[%c0_25, %c0_26] : memref<16x128xf32, #tpu.memory_space<vmem>>, vector<16x128xf32>
        tpu.vector_store %arg6[%c0_25, %c0_26], %40 {strides = array<i32>} : memref<16x128xf32, #tpu.memory_space<vmem>>, vector<16x128xf32>,
        %cst_27 = arith.constant 0.000000e+00 : f32
        %42 = vector.broadcast %cst_27 : f32 to vector<16x128xf32>
        %c0_28 = arith.constant 0 : index
        %c0_29 = arith.constant 0 : index
        %43 = vector.load %arg7[%c0_28, %c0_29] : memref<16x128xf32, #tpu.memory_space<vmem>>, vector<16x128xf32>
        tpu.vector_store %arg7[%c0_28, %c0_29], %42 {strides = array<i32>} : memref<16x128xf32, #tpu.memory_space<vmem>>, vector<16x128xf32>,
        %cst_30 = arith.constant 0.000000e+00 : f32
        %44 = vector.broadcast %cst_30 : f32 to vector<16x128xf32>
        %c0_31 = arith.constant 0 : index
        %c0_32 = arith.constant 0 : index
        %45 = vector.load %arg8[%c0_31, %c0_32] : memref<16x128xf32, #tpu.memory_space<vmem>>, vector<16x128xf32>
        tpu.vector_store %arg8[%c0_31, %c0_32], %44 {strides = array<i32>} : memref<16x128xf32, #tpu.memory_space<vmem>>, vector<16x128xf32>,
        %cst_33 = arith.constant 0.000000e+00 : f32
        %46 = vector.broadcast %cst_33 : f32 to vector<1x1xf32>
        %c0_34 = arith.constant 0 : index
        %c0_35 = arith.constant 0 : index
        %47 = vector.load %arg5[%c0_34, %c0_35] : memref<1x1xf32, #tpu.memory_space<vmem>>, vector<1x1xf32>
        tpu.vector_store %arg5[%c0_34, %c0_35], %46 {strides = array<i32>} : memref<1x1xf32, #tpu.memory_space<vmem>>, vector<1x1xf32>,
      } else {
      }
      %c0_8 = arith.constant 0 : index
      %c0_9 = arith.constant 0 : index
      %22 = vector.load %arg6[%c0_8, %c0_9] : memref<16x128xf32, #tpu.memory_space<vmem>>, vector<16x128xf32>
      %cst = arith.constant -3.40282347E+38 : f32
      %23 = vector.broadcast %cst : f32 to vector<16x128xf32>
      %24 = arith.select %10, %12, %23 : vector<16x128xi1>, vector<16x128xf32>
      %25 = arith.maximumf %22, %24 : vector<16x128xf32>
      %c0_10 = arith.constant 0 : index
      %c0_11 = arith.constant 0 : index
      %26 = vector.load %arg6[%c0_10, %c0_11] : memref<16x128xf32, #tpu.memory_space<vmem>>, vector<16x128xf32>
      tpu.vector_store %arg6[%c0_10, %c0_11], %25 {strides = array<i32>} : memref<16x128xf32, #tpu.memory_space<vmem>>, vector<16x128xf32>,
      %c0_12 = arith.constant 0 : index
      %c0_13 = arith.constant 0 : index
      %27 = vector.load %arg7[%c0_12, %c0_13] : memref<16x128xf32, #tpu.memory_space<vmem>>, vector<16x128xf32>
      %cst_14 = arith.constant 0.000000e+00 : f32
      %28 = vector.broadcast %cst_14 : f32 to vector<16x128xf32>
      %29 = arith.select %10, %11, %28 : vector<16x128xi1>, vector<16x128xf32>
      %30 = arith.addf %27, %29 : vector<16x128xf32>
      %c0_15 = arith.constant 0 : index
      %c0_16 = arith.constant 0 : index
      %31 = vector.load %arg7[%c0_15, %c0_16] : memref<16x128xf32, #tpu.memory_space<vmem>>, vector<16x128xf32>
      tpu.vector_store %arg7[%c0_15, %c0_16], %30 {strides = array<i32>} : memref<16x128xf32, #tpu.memory_space<vmem>>, vector<16x128xf32>,
      %c0_17 = arith.constant 0 : index
      %c0_18 = arith.constant 0 : index
      %32 = vector.load %arg8[%c0_17, %c0_18] : memref<16x128xf32, #tpu.memory_space<vmem>>, vector<16x128xf32>
      %cst_19 = arith.constant 0.000000e+00 : f32
      %33 = vector.broadcast %cst_19 : f32 to vector<16x128xf32>
      %34 = arith.select %10, %12, %33 : vector<16x128xi1>, vector<16x128xf32>
      %35 = arith.addf %32, %34 : vector<16x128xf32>
      %c0_20 = arith.constant 0 : index
      %c0_21 = arith.constant 0 : index
      %36 = vector.load %arg8[%c0_20, %c0_21] : memref<16x128xf32, #tpu.memory_space<vmem>>, vector<16x128xf32>
      tpu.vector_store %arg8[%c0_20, %c0_21], %35 {strides = array<i32>} : memref<16x128xf32, #tpu.memory_space<vmem>>, vector<16x128xf32>,
      %c0_i32_22 = arith.constant 0 : i32
      %37 = arith.cmpi eq, %arg1, %c0_i32_22 : i32
      %38 = arith.extui %37 : i1 to i32
      %c0_i32_23 = arith.constant 0 : i32
      %39 = arith.cmpi ne, %38, %c0_i32_23 : i32
      scf.if %39 {
        %c0_24 = arith.constant 0 : index
        %c0_25 = arith.constant 0 : index
        %40 = vector.load %arg6[%c0_24, %c0_25] : memref<16x128xf32, #tpu.memory_space<vmem>>, vector<16x128xf32>
        %41 = vector.shape_cast %40 : vector<16x128xf32> to vector<1x16x128xf32>
        %cst_26 = arith.constant dense<0xFF800000> : vector<1xf32>
        %42 = vector.multi_reduction <maximumf>, %41, %cst_26 [1, 2] : vector<1x16x128xf32> to vector<1xf32>
        %43 = vector.shape_cast %42 : vector<1xf32> to vector<1x1x1xf32>
        %44 = vector.extract %43[0, 0, 0] : f32 from vector<1x1x1xf32>
        %c0_27 = arith.constant 0 : index
        %c0_28 = arith.constant 0 : index
        %45 = vector.load %arg7[%c0_27, %c0_28] : memref<16x128xf32, #tpu.memory_space<vmem>>, vector<16x128xf32>
        %46 = vector.shape_cast %45 : vector<16x128xf32> to vector<1x16x128xf32>
        %cst_29 = arith.constant dense<0.000000e+00> : vector<1xf32>
        %47 = vector.multi_reduction <add>, %46, %cst_29 [1, 2] : vector<1x16x128xf32> to vector<1xf32>
        %48 = vector.shape_cast %47 : vector<1xf32> to vector<1x1x1xf32>
        %49 = vector.extract %48[0, 0, 0] : f32 from vector<1x1x1xf32>
        %c0_30 = arith.constant 0 : index
        %c0_31 = arith.constant 0 : index
        %50 = vector.load %arg8[%c0_30, %c0_31] : memref<16x128xf32, #tpu.memory_space<vmem>>, vector<16x128xf32>
        %51 = vector.shape_cast %50 : vector<16x128xf32> to vector<1x16x128xf32>
        %cst_32 = arith.constant dense<0.000000e+00> : vector<1xf32>
        %52 = vector.multi_reduction <add>, %51, %cst_32 [1, 2] : vector<1x16x128xf32> to vector<1xf32>
        %53 = vector.shape_cast %52 : vector<1xf32> to vector<1x1x1xf32>
        %54 = vector.extract %53[0, 0, 0] : f32 from vector<1x1x1xf32>
        %cst_33 = arith.constant 1.000000e+00 : f32
        %55 = arith.divf %cst_33, %44 : f32
        %56 = arith.mulf %54, %55 : f32
        %c0_34 = arith.constant 0 : index
        %57 = memref.load %arg10[%c0_34] : memref<3xf32, #tpu.memory_space<smem>>
        memref.store %55, %arg10[%c0_34] : memref<3xf32, #tpu.memory_space<smem>>
        %cst_35 = arith.constant 1.000000e-10 : f32
        %58 = arith.addf %49, %cst_35 : f32
        %cst_36 = arith.constant 1.000000e+00 : f32
        %59 = arith.divf %cst_36, %58 : f32
        %c1 = arith.constant 1 : index
        %60 = memref.load %arg10[%c1] : memref<3xf32, #tpu.memory_space<smem>>
        memref.store %59, %arg10[%c1] : memref<3xf32, #tpu.memory_space<smem>>
        %cst_37 = arith.constant 1.000000e-10 : f32
        %61 = arith.addf %56, %cst_37 : f32
        %cst_38 = arith.constant 1.000000e+00 : f32
        %62 = arith.divf %cst_38, %61 : f32
        %c2 = arith.constant 2 : index
        %63 = memref.load %arg10[%c2] : memref<3xf32, #tpu.memory_space<smem>>
        memref.store %62, %arg10[%c2] : memref<3xf32, #tpu.memory_space<smem>>
      } else {
      }
    } else {
    }
    %c1_i32 = arith.constant 1 : i32
    %16 = arith.cmpi eq, %arg0, %c1_i32 : i32
    %17 = arith.extui %16 : i1 to i32
    %c0_i32_5 = arith.constant 0 : i32
    %18 = arith.cmpi ne, %17, %c0_i32_5 : i32
    scf.if %18 {
      %c0_6 = arith.constant 0 : index
      %19 = memref.load %arg10[%c0_6] : memref<3xf32, #tpu.memory_space<smem>>
      %c1 = arith.constant 1 : index
      %20 = memref.load %arg10[%c1] : memref<3xf32, #tpu.memory_space<smem>>
      %c2 = arith.constant 2 : index
      %21 = memref.load %arg10[%c2] : memref<3xf32, #tpu.memory_space<smem>>
      %c0_i32_7 = arith.constant 0 : i32
      %22 = arith.cmpi eq, %arg1, %c0_i32_7 : i32
      %23 = arith.extui %22 : i1 to i32
      %c0_i32_8 = arith.constant 0 : i32
      %24 = arith.cmpi ne, %23, %c0_i32_8 : i32
      scf.if %24 {
        %cst_18 = arith.constant 0.000000e+00 : f32
        %50 = vector.broadcast %cst_18 : f32 to vector<16x128xf32>
        %c0_19 = arith.constant 0 : index
        %c0_20 = arith.constant 0 : index
        %51 = vector.load %arg9[%c0_19, %c0_20] : memref<16x128xf32, #tpu.memory_space<vmem>>, vector<16x128xf32>
        tpu.vector_store %arg9[%c0_19, %c0_20], %50 {strides = array<i32>} : memref<16x128xf32, #tpu.memory_space<vmem>>, vector<16x128xf32>,
      } else {
      }
      %cst = arith.constant 1.000000e-01 : f32
      %25 = vector.broadcast %cst : f32 to vector<16x128xf32>
      %26 = arith.cmpf ogt, %11, %25 : vector<16x128xf32>
      %27 = arith.extui %26 : vector<16x128xi1> to vector<16x128xi32>
      %28 = arith.sitofp %27 : vector<16x128xi32> to vector<16x128xf32>
      %29 = vector.broadcast %20 : f32 to vector<16x128xf32>
      %30 = arith.mulf %11, %29 : vector<16x128xf32>
      %31 = arith.mulf %19, %21 : f32
      %32 = vector.broadcast %31 : f32 to vector<16x128xf32>
      %33 = arith.mulf %12, %32 : vector<16x128xf32>
      %34 = arith.mulf %28, %30 : vector<16x128xf32>
      %cst_9 = arith.constant 1.000000e-10 : f32
      %35 = vector.broadcast %cst_9 : f32 to vector<16x128xf32>
      %36 = arith.addf %33, %35 : vector<16x128xf32>
      %37 = arith.divf %30, %36 : vector<16x128xf32>
      %cst_10 = arith.constant 1.000000e-10 : f32
      %38 = vector.broadcast %cst_10 : f32 to vector<16x128xf32>
      %39 = arith.addf %37, %38 : vector<16x128xf32>
      %40 = math.log %39 : vector<16x128xf32>
      %41 = arith.mulf %34, %40 : vector<16x128xf32>
      %c0_11 = arith.constant 0 : index
      %c0_12 = arith.constant 0 : index
      %42 = vector.load %arg9[%c0_11, %c0_12] : memref<16x128xf32, #tpu.memory_space<vmem>>, vector<16x128xf32>
      %cst_13 = arith.constant 0.000000e+00 : f32
      %43 = vector.broadcast %cst_13 : f32 to vector<16x128xf32>
      %44 = arith.select %10, %41, %43 : vector<16x128xi1>, vector<16x128xf32>
      %45 = arith.addf %42, %44 : vector<16x128xf32>
      %c0_14 = arith.constant 0 : index
      %c0_15 = arith.constant 0 : index
      %46 = vector.load %arg9[%c0_14, %c0_15] : memref<16x128xf32, #tpu.memory_space<vmem>>, vector<16x128xf32>
      tpu.vector_store %arg9[%c0_14, %c0_15], %45 {strides = array<i32>} : memref<16x128xf32, #tpu.memory_space<vmem>>, vector<16x128xf32>,
      %c0_i32_16 = arith.constant 0 : i32
      %47 = arith.cmpi eq, %arg1, %c0_i32_16 : i32
      %48 = arith.extui %47 : i1 to i32
      %c0_i32_17 = arith.constant 0 : i32
      %49 = arith.cmpi ne, %48, %c0_i32_17 : i32
      scf.if %49 {
        %c0_18 = arith.constant 0 : index
        %c0_19 = arith.constant 0 : index
        %50 = vector.load %arg9[%c0_18, %c0_19] : memref<16x128xf32, #tpu.memory_space<vmem>>, vector<16x128xf32>
        %51 = vector.shape_cast %50 : vector<16x128xf32> to vector<1x16x128xf32>
        %cst_20 = arith.constant dense<0.000000e+00> : vector<1xf32>
        %52 = vector.multi_reduction <add>, %51, %cst_20 [1, 2] : vector<1x16x128xf32> to vector<1xf32>
        %53 = vector.shape_cast %52 : vector<1xf32> to vector<1x1x1xf32>
        %54 = vector.extract %53[0, 0, 0] : f32 from vector<1x1x1xf32>
        %55 = vector.broadcast %54 : f32 to vector<1x1xf32>
        %c0_21 = arith.constant 0 : index
        %c0_22 = arith.constant 0 : index
        %56 = vector.load %arg5[%c0_21, %c0_22] : memref<1x1xf32, #tpu.memory_space<vmem>>, vector<1x1xf32>
        tpu.vector_store %arg5[%c0_21, %c0_22], %55 {strides = array<i32>} : memref<1x1xf32, #tpu.memory_space<vmem>>, vector<1x1xf32>,
      } else {
      }
    } else {
    }
    return
  }
  func.func @transform_0(%arg0: i32, %arg1: i32, %arg2: memref<1xi32, #tpu.memory_space<smem>>) -> (i32, i32) {
    %c0_i32 = arith.constant 0 : i32
    %c0_i32_0 = arith.constant 0 : i32
    return %arg1, %c0_i32 : i32, i32
  }
  func.func @transform_1(%arg0: i32, %arg1: i32, %arg2: memref<1xi32, #tpu.memory_space<smem>>) -> (i32, i32) {
    %c0_i32 = arith.constant 0 : i32
    %c0_i32_0 = arith.constant 0 : i32
    return %arg1, %c0_i32 : i32, i32
  }
  func.func @transform_2(%arg0: i32, %arg1: i32, %arg2: memref<1xi32, #tpu.memory_space<smem>>) -> (i32, i32) {
    %c0_i32 = arith.constant 0 : i32
    %c0_i32_0 = arith.constant 0 : i32
    %c0_i32_1 = arith.constant 0 : i32
    return %c0_i32, %c0_i32_0 : i32, i32
  }
}

</mosaic_0001>

<bundles_post_ra>
// kernel: kl_divergence.1
= control target key start
LH: loop header
LB: loop body
LE: loop exit
PB: predicated region body
PF: predicated region fallthrough
CT: control target
= control target key end

     0   :  { %s699_s0 = inlined_call_operand.<no memory space> [shape: s32[1], index: 0, kind: input, shape index: {}]   ;;  %s700_s1 = inlined_call_operand.vmem [shape: f32[16,128], index: 1, kind: input, shape index: {}]   ;;  %s701_s2 = inlined_call_operand.vmem [shape: f32[16,128], index: 2, kind: input, shape index: {}]   ;;  %s702_s3 = inlined_call_operand.hbm [shape: f32[1,1], index: 3, kind: output, shape index: {}]  }
   0x1   :  { %8 = sst [smem:[#allocation8]] %s699_s0 }
   0x2   :  { %9 = vsyncpa [#allocation10], 0  ;;  %s583_s14 = smov 0   ;;  %s585_s15 = smov 0  }
   0x3   :  { %s587_s16 = smov 0  }
   0x4 LB: > { %s427_s0 = sadd.s32 4294967295, %s555_s16   ;;  %s27_s17 = sadd.s32 1, %s551_s15  ;;  %s555_s16 = sphi %s587_s16, %s15_s16   ;;  %s551_s15 = sphi %s585_s15, %s709_s15   ;;  %s547_s14 = sphi %s583_s14, %s708_s14  }
   0x5   : > { %p29_p0 = scmp.ge.s32.totalorder %s27_s17, 2  ;;  %p431_p1 = scmp.ge.s32.totalorder %s555_s16, 1 }
   0x6   : > { %p134_p2 = scmp.lt.s32.totalorder %s555_s16, 3 }
   0x7   : > { %s711_s17 = smov (%p29_p0, %s27_s17), 0 }
   0x8   : > { %p135_p3 = pnand %p431_p1, %p134_p2 }
   0x9   : > { %s168_s18 = sld [smem:[#allocation8]] (!%p135_p3)  ;;  %v169_v0 = vlaneseq (!%p135_p3)  ;;  %v607_v1 = vld [vmem:[%s700_s1] sm:$0xff] (!%p135_p3)  ;;  %v612_v2 = vld [vmem:[%s700_s1 + $0x8] sm:$0xff] (!%p135_p3)  ;;  %p432_p4 = scmp.ne.s32.totalorder (!%p135_p3), %s547_s14, 0 }
   0xa   : > { %138 = sbr.rel (%p135_p3) target bundleno = 637 (0x27d), region = 28  ;;  %v617_v3 = vld [vmem:[%s701_s2] sm:$0xff] (!%p135_p3)  ;;  %v622_v4 = vld [vmem:[%s701_s2 + $0x8] sm:$0xff] (!%p135_p3) }
   0xb   : > { %v170_v5 = vshrl.u32 (!%p135_p3), %v169_v0, 7  ;;  %v173_v6 = vand.u32 (!%p135_p3), 127, %v169_v0 }
   0xd   : > { %v171_v7 = vadd.s32 (!%p135_p3), 8, %v170_v5  ;;  %v178_v8 = vmul.u32 (!%p135_p3), 128, %v170_v5 }
   0xf   : > { %v179_v9 = vmul.u32 (!%p135_p3), 128, %v171_v7  ;;  %v180_v10 = vadd.s32 (!%p135_p3), %v178_v8, %v173_v6  ;;  %v182_v11 = vstv (!%p135_p3), %s168_s18 }
  0x11   : > { %v181_v12 = vadd.s32 %v179_v9, %v173_v6  ;;  %vm624_vm0 = vcmp.lt.s32.totalorder %v180_v10, %v182_v11  ;;  %192 = sbr.rel (%p432_p4) target bundleno = 358 (0x166), region = 32  ;;  %vm203_vm2 = vcmask (!%p432_p4), 0   ;;  %v557_v26 = vmov (!%p432_p4), 0.0  }
  0x12   : > { %v207_v15 = vsel (!%p432_p4), %vm624_vm0, %v617_v3, -3.4028235e+38  ;;  %v223_v17 = vsel (!%p432_p4), %vm624_vm0, %v617_v3, 0.0  ;;  %v215_v22 = vsel (!%p432_p4), %vm624_vm0, %v607_v1, 0.0  ;;  %204 = vst.msk [vmem:[#allocation9] sm:$0x1] (!%p432_p4), %vm203_vm2, %v557_v26 }
  0x13   : > { %vm628_vm1 = vcmp.lt.s32.totalorder %v181_v12, %v182_v11  ;;  %v209_v19 = vmax.f32 (!%p432_p4), %v207_v15, -3.4028235e+38 }
  0x14   : > { %v208_v16 = vsel (!%p432_p4), %vm628_vm1, %v622_v4, -3.4028235e+38  ;;  %v224_v18 = vsel (!%p432_p4), %vm628_vm1, %v622_v4, 0.0  ;;  %v216_v23 = vsel (!%p432_p4), %vm628_vm1, %v612_v2, 0.0 }
  0x15   : > { %v210_v20 = vmax.f32 (!%p432_p4), %v208_v16, -3.4028235e+38  ;;  %v258_v21 = vadd.f32 (!%p432_p4), %v224_v18, %v223_v17  ;;  %v246_v25 = vadd.f32 (!%p432_p4), %v216_v23, %v215_v22 }
  0x17   : > { %v234_v24 = vmax.f32 (!%p432_p4), %v209_v19, %v210_v20  ;;  %259 = vadd.xlane.f32.xlu1 (!%p432_p4), %v258_v21 }
  0x19   : > { %235 = vmax.xlane.f32.xlu0 %v234_v24 }
  0x1d   : > { %247 = vadd.xlane.f32.xlu0 %v246_v25 }
  0xa4   : > { %v260_v27 = vpop.xlane.xlu1 %259 }
  0xa5   : > { %v261_v28 = vrot.slane %v260_v27, 4 }
  0xa6   : > { %v236_v29 = vpop.xlane.xlu0 %235 }
  0xa7   : > { %v237_v30 = vrot.slane %v236_v29, 4  ;;  %v262_v31 = vadd.f32 %v261_v28, %v260_v27 }
  0xa9   : > { %v238_v32 = vmax.f32 %v236_v29, %v237_v30  ;;  %v263_v33 = vrot.slane %v262_v31, 2 }
  0xaa   : > { %v248_v34 = vpop.xlane.xlu0 %247 }
  0xab   : > { %v239_v35 = vrot.slane %v238_v32, 2  ;;  %v249_v36 = vrot.slane %v248_v34, 4  ;;  %v264_v37 = vadd.f32 %v263_v33, %v262_v31 }
  0xad   : > { %v240_v38 = vmax.f32 %v238_v32, %v239_v35  ;;  %v250_v39 = vadd.f32 %v249_v36, %v248_v34  ;;  %v265_v42 = vrot.slane %v264_v37, 1 }
  0xaf   : > { %v241_v40 = vrot.slane %v240_v38, 1  ;;  %v251_v41 = vrot.slane %v250_v39, 2  ;;  %v266_v46 = vadd.f32 %v265_v42, %v264_v37 }
  0xb1   : > { %v242_v43 = vmax.f32 %v240_v38, %v241_v40  ;;  %v252_v44 = vadd.f32 %v251_v41, %v250_v39 }
  0xb3   : > { %442 = vpush %v242_v43  ;;  %v253_v45 = vrot.slane %v252_v44, 1 }
  0xb5   : > { %v254_v47 = vadd.f32 %v253_v45, %v252_v44 }
  0xb7   : > { %444 = vpush %v254_v47 }
  0xb8   : > { %446 = vpush %v266_v46 }
  0xe4   : > { %s443_s27 = spop %442 }
  0xe5   : > { %v268_v48 = vstv %s443_s27 }
  0xe6   : > { %489 = vrcp.f32 %v268_v48 }
  0xe8   : > { %s445_s28 = spop %444 }
  0xe9   : > { %s274_s29 = sadd.f32 1e-10, %s445_s28  ;;  %s447_s30 = spop %446 }
  0xeb   : > { %v275_v49 = vstv %s274_s29 }
  0xec   : > { %491 = vrcp.f32 %v275_v49 }
  0xf0   : > { %v490_v50 = vpop.eup %489 }
  0xf1   : > { %448 = vpush %v490_v50 }
  0xf6   : > { %v492_v51 = vpop.eup %491 }
  0xf7   : > { %450 = vpush %v492_v51 }
 0x122   : > { %s449_s4 = spop %448 }
 0x123   : > { %s271_s5 = smul.f32 %s449_s4, %s447_s30  ;;  %273 = sst [smem:[#allocation6]] %s449_s4 }
 0x125   : > { %s280_s6 = sadd.f32 1e-10, %s271_s5 }
 0x127   : > { %v281_v52 = vstv %s280_s6 }
 0x128   : > { %493 = vrcp.f32 %v281_v52  ;;  %s451_s7 = spop %450 }
 0x129   : > { %279 = sst [smem:[#allocation6 + $0x1]] %s451_s7 }
 0x132   : > { %v494_v53 = vpop.eup %493 }
 0x133   : > { %452 = vpush %v494_v53 }
 0x164   : > { %s453_s8 = spop %452 }
 0x165   : > { %285 = sst [smem:[#allocation6 + $0x2]] %s453_s8 }
 0x166 PF: > { %p433_p5 = scmp.ne.s32.totalorder %s547_s14, 1 }
 0x167   : > { %s290_s9 = sld [smem:[#allocation6]] (!%p433_p5)  ;;  %s435_s10 = sld [smem:[#allocation6 + $0x2]] (!%p433_p5)  ;;  %vm299_vm3 = vcmp.gt.f32.partialorder (!%p433_p5), %v607_v1, 0.1  ;;  %vm300_vm4 = vcmp.gt.f32.partialorder (!%p433_p5), %v612_v2, 0.1 }
 0x168   : > { %289 = sbr.rel (%p433_p5) target bundleno = 612 (0x264), region = 44  ;;  %s434_s12 = sld [smem:[#allocation6 + $0x1]] (!%p433_p5)  ;;  %vm352_vm5 = vcmask (!%p433_p5), 0  }
 0x16d   : > { %s308_s11 = smul.f32 (!%p433_p5), %s435_s10, %s290_s9 }
 0x16e   : > { %v305_v59 = vstv (!%p433_p5), %s434_s12 }
 0x16f   : > { %v309_v54 = vstv %s308_s11  ;;  %v306_v60 = vmul.f32 %v305_v59, %v607_v1  ;;  %v307_v61 = vmul.f32 %v305_v59, %v612_v2 }
 0x170   : > { %v310_v55 = vmul.f32 %v309_v54, %v617_v3  ;;  %v311_v56 = vmul.f32 %v309_v54, %v622_v4  ;;  %v558_v3 = vmov 0.0  }
 0x171   : > { %v436_v4 = vsel %vm299_vm3, 1.0, %v558_v3  ;;  %v437_v8 = vsel %vm300_vm4, 1.0, %v558_v3 }
 0x172   : > { %v314_v57 = vadd.f32 1e-10, %v310_v55  ;;  %v315_v58 = vadd.f32 1e-10, %v311_v56  ;;  %v312_v9 = vmul.f32 %v436_v4, %v306_v60  ;;  %v313_v11 = vmul.f32 %v437_v8, %v307_v61 }
 0x174   : > { %495 = vrcp.f32 %v314_v57 }
 0x175   : > { %497 = vrcp.f32 %v315_v58 }
 0x17e   : > { %v496_v62 = vpop.eup %495 }
 0x17f   : > { %v498_v63 = vpop.eup %497  ;;  %v317_v0 = vmul.f32 %v496_v62, %v306_v60 }
 0x180   : > { %v319_v5 = vmul.f32 %v498_v63, %v307_v61 }
 0x181   : > { %v320_v6 = vadd.f32 1e-10, %v317_v0 }
 0x182   : > { %v321_v7 = vadd.f32 1e-10, %v319_v5 }
 0x183   : > { %499 = vlog2.f32 %v320_v6 }
 0x184   : > { %501 = vlog2.f32 %v321_v7 }
 0x18d   : > { %v500_v10 = vpop.eup %499 }
 0x18e   : > { %v502_v12 = vpop.eup %501  ;;  %v323_v15 = vmul.f32 0.6931472, %v500_v10 }
 0x18f   : > { %v325_v16 = vmul.f32 0.6931472, %v502_v12 }
 0x190   : > { %v326_v17 = vmul.f32 %v323_v15, %v312_v9 }
 0x191   : > { %v327_v18 = vmul.f32 %v325_v16, %v313_v11 }
 0x192   : > { %v330_v19 = vsel %vm624_vm0, %v326_v17, 0.0 }
 0x193   : > { %v331_v20 = vsel %vm628_vm1, %v327_v18, 0.0 }
 0x194   : > { %v341_v1 = vadd.f32 %v331_v20, %v330_v19 }
 0x196   : > { %342 = vadd.xlane.f32.xlu0 %v341_v1 }
 0x223   : > { %v343_v2 = vpop.xlane.xlu0 %342 }
 0x224   : > { %v344_v21 = vrot.slane %v343_v2, 4 }
 0x226   : > { %v345_v22 = vadd.f32 %v344_v21, %v343_v2 }
 0x228   : > { %v346_v23 = vrot.slane %v345_v22, 2 }
 0x22a   : > { %v347_v24 = vadd.f32 %v346_v23, %v345_v22 }
 0x22c   : > { %v348_v25 = vrot.slane %v347_v24, 1 }
 0x22e   : > { %v349_v26 = vadd.f32 %v348_v25, %v347_v24 }
 0x230   : > { %454 = vpush %v349_v26 }
 0x261   : > { %s455_s13 = spop %454 }
 0x262   : > { %v351_v27 = vstv %s455_s13 }
 0x263   : > { %353 = vst.msk [vmem:[#allocation9] sm:$0x1] %vm352_vm5, %v351_v27 }
 0x264 PF: > { %p664_p6 = scmp.eq.s32.totalorder %s427_s0, 1  ;;  %s559_s18 = smov [#allocation9]  }
 0x265   : > { %s361_s19 = sshll.u32 %s559_s18, 4  ;;  %s362_s19 = int_to_ptr.vmem [resolvable:$true] %s361_s19 }
 0x266   : > { %s503_s20 = scalar_lea.vmem %s362_s19, 16  ;;  %s509_s21 = scalar_lea.vmem %s362_s19, 32 }
 0x267   : > { %p504_p7 = scmp.ne.s32.totalorder %s362_s19, %s503_s20  ;;  %p510_p10 = scmp.lt.s32.totalorder %s362_s19, %s362_s19 }
 0x268   : > { %p511_p11 = scmp.lt.s32.totalorder %s509_s21, %s503_s20 }
 0x269   : > { %p505_p8 = pnand %p504_p7, %p664_p6 }
 0x26a   : > { %p512_p12 = por %p511_p11, %p510_p10 }
 0x26b   : > { %p506_p9 = pneg %p505_p8 }
 0x26d   : > { %p513_p13 = pnand %p512_p12, %p506_p9 }
 0x26f   : > { %516 = shalt.err (!%p513_p13)
}
 0x270   : > { %s517_s23 = scalar_lea.hbm %s702_s3, 16 }
 0x271   : > { %p518_p0 = scmp.ne.s32.totalorder %s702_s3, %s517_s23  ;;  %p523_p3 = scmp.lt.u32.totalorder %s517_s23, %s702_s3 }
 0x273   : > { %p519_p1 = pnand %p518_p0, %p664_p6 }
 0x275   : > { %p520_p2 = pneg %p519_p1 }
 0x277   : > { %p525_p4 = pnand %p523_p3, %p520_p2 }
 0x279   : > { %528 = shalt.err (!%p525_p4)
}
 0x27a   : > { %457 = dma.vmem_to_hbm [thread:$0]  (%p664_p6), %s362_s19, 16, %s702_s3, [#allocation10]  }
 0x27b   : > { %542 = dma.done.wait (%p664_p6), [#allocation10], 16  }
 0x27c   : > { %544 = vsyncadd (%p664_p6), [#allocation10], 4294967280 }
 0x27d PF: > { %s15_s16 = sadd.s32 1, %s555_s16   ;;  %s708_s14 = smov %s551_s15 }
 0x27e   : > { %p12_p5 = scmp.ge.s32.totalorder %s15_s16, 4   ;;  %s709_s15 = smov %s711_s17 }
 0x280   :  { %14 = sbr.rel (!%p12_p5) target bundleno = 4 (0x4), region = 85 }
 0x287   :  { %374 = vsyncpa [#allocation10], 1 }
 0x288   :  { %376 = vsyncpa [#allocation10 + $0x1], 1 }

</bundles_post_ra>
